<compile_context>
chip_gen: v7x
topology: tpu7x:2x2x1
jax: 0.10.0
libtpu: 0.0.40
codegen_flags: <defaults>
</compile_context>

<pallas_src>
from functools import partial

import jax
import jax.numpy as jnp
from jax.experimental import pallas as pl
from jax.experimental.pallas import tpu as pltpu

_NEG = jnp.float32(-1e30)  # mask for padded logit lanes (keeps log_softmax exact)


def _round_up(v, m):
    return (v + m - 1) // m * m


def rnn_fused_kernel(x_ref, h0_ref, wd_ref, wh_ref, bi_ref, wo_ref, bo_ref,
                     hT_ref, out_ref, h_acc):
    """One grid point = one (batch_tile, time step). grid = (nb, T + 1).

    NOTE: the recurrence (h_acc init at t == 0, hT flush at t == T) relies on
    the time axis being the LAST (innermost) grid dimension. Do not reorder.

    x_ref   : (1, tB, D)        inputs for timestep min(t, T-1)
    h0_ref  : (tB, H_pad)       initial hidden state for this batch tile
    wd_ref  : (D, H_pad)        data -> hidden weights     (VMEM resident)
    wh_ref  : (H_pad, H_pad)    hidden -> hidden weights   (VMEM resident)
    bi_ref  : (1, H_pad)        i2h bias (f32)
    wo_ref  : (H_pad, O_pad)    hidden -> output weights   (VMEM resident)
    bo_ref  : (1, O_pad)        h2o bias (padded lanes = -1e30)
    hT_ref  : (tB, H_pad)       final hidden state (written at t == T)
    out_ref : (1, tB, O_pad)    log-softmax for step t-1 (written for t >= 1)
    h_acc   : (tB, H_pad) f32   recurrent state carried across the time axis
    """
    t = pl.program_id(1)
    last = pl.num_programs(1) - 1  # == T (flush iteration)

    @pl.when(t == 0)
    def _():
        h_acc[...] = h0_ref[...].astype(jnp.float32)

    h_prev = h_acc[...]  # = new_h_{t-1} (h0 at t == 0), f32

    # ---- h2o + log_softmax for the PREVIOUS step (off the critical path) ----
    @pl.when(t > 0)
    def _():
        logits = (jnp.dot(h_prev.astype(wo_ref.dtype), wo_ref[...],
                          preferred_element_type=jnp.float32)
                  + bo_ref[...].astype(jnp.float32))
        m = jnp.max(logits, axis=-1, keepdims=True)   # padded lanes are -1e30
        shifted = logits - m
        lse = jnp.log(jnp.sum(jnp.exp(shifted), axis=-1, keepdims=True))
        out_ref[0] = (shifted - lse).astype(out_ref.dtype)

    # ---- i2h recurrence for the CURRENT step ----
    #   new_h = x_t @ W_d + h_{t-1} @ W_h + b_i2h
    # TODO(synk): on v7x, accumulate both dots directly in the MXU MRB
    # (pltpu.matmul_push_rhs / matmul_acc_lhs / matmul_pop) instead of a VPU
    # add of two f32 intermediates.
    @pl.when(t < last)
    def _():
        x_t = x_ref[0]                                 # (tB, D)
        new_h = (jnp.dot(x_t.astype(wd_ref.dtype), wd_ref[...],
                         preferred_element_type=jnp.float32)
                 + jnp.dot(h_prev.astype(wh_ref.dtype), wh_ref[...],
                           preferred_element_type=jnp.float32)
                 + bi_ref[...].astype(jnp.float32))
        h_acc[...] = new_h

    # ---- final hidden writeback on the flush iteration ----
    @pl.when(t == last)
    def _():
        hT_ref[...] = h_prev.astype(hT_ref.dtype)


@partial(jax.jit, static_argnames=("batch_tile", "weight_dtype",
                                   "recurrent_weight_dtype", "out_dtype"))
def rnn_forward_sequence(xs, hidden0, w_i2h, b_i2h, w_h2o, b_h2o, *,
                         batch_tile=None, weight_dtype=None,
                         recurrent_weight_dtype=None, out_dtype=None):
    """Run the RNN cell over a whole sequence inside one pallas_call.

    xs      : (T, B, data_size)
    hidden0 : (B, hidden_size)
    w_i2h   : (data_size + hidden_size, hidden_size)   pre-transposed
    b_i2h   : (1, hidden_size)
    w_h2o   : (hidden_size, output_size)               pre-transposed
    b_h2o   : (1, output_size)

    weight_dtype           : dtype for W_d / W_o (and xs); e.g. jnp.bfloat16.
    recurrent_weight_dtype : dtype for the W_h dot (defaults to weight_dtype;
                             pass jnp.float32 if long-T bf16 drift matters).
    out_dtype              : dtype of the per-step log-prob output.

    Returns (final_hidden (B, hidden_size) f32, log_probs (T, B, output_size)).
    """
    T, B, data_size = xs.shape
    hidden_size = hidden0.shape[1]
    output_size = w_h2o.shape[1]

    # Lane-dense padded feature dims. data_size stays UNPADDED (full-extent K).
    D = data_size
    H_pad = _round_up(hidden_size, 128)
    O_pad = _round_up(output_size, 128)

    if batch_tile is None:
        B8 = _round_up(B, 8)
        if B8 <= 8:
            batch_tile = B8
        else:
            # >= 2 batch tiles keeps both v7x TensorCores busy on the
            # "parallel" axis; cap at 256 rows to match the v6e/v7x 256x256 MXU
            # (v5e's 128^2 MXU still fills fine with <=256-row LHS tiles).
            batch_tile = min(_round_up(-(-B8 // 2), 8), 256)
    B_pad = _round_up(B, batch_tile)
    nb = B_pad // batch_tile

    w_dt = jnp.dtype(weight_dtype) if weight_dtype is not None else w_i2h.dtype
    wh_dt = (jnp.dtype(recurrent_weight_dtype)
             if recurrent_weight_dtype is not None else w_dt)
    x_dt = w_dt if weight_dtype is not None else xs.dtype
    out_dt = jnp.dtype(out_dtype) if out_dtype is not None else xs.dtype

    # Split W_i2h into data / recurrent halves (removes the in-kernel concat).
    w_d = w_i2h[:data_size]
    w_h = w_i2h[data_size:]

    xs_p = jnp.pad(xs, ((0, 0), (0, B_pad - B), (0, 0))).astype(x_dt)
    h0_p = jnp.pad(hidden0.astype(jnp.float32),
                   ((0, B_pad - B), (0, H_pad - hidden_size)))
    w_d_p = jnp.pad(w_d, ((0, 0), (0, H_pad - hidden_size))).astype(w_dt)
    w_h_p = jnp.pad(w_h, ((0, H_pad - hidden_size),
                          (0, H_pad - hidden_size))).astype(wh_dt)
    b_i_p = jnp.pad(b_i2h.astype(jnp.float32),
                    ((0, 0), (0, H_pad - hidden_size)))
    w_o_p = jnp.pad(w_h2o, ((0, H_pad - hidden_size),
                            (0, O_pad - output_size))).astype(w_dt)
    # Padded logit lanes masked via bias so softmax ignores them.
    b_o_p = jnp.pad(b_h2o.astype(jnp.float32),
                    ((0, 0), (0, O_pad - output_size)), constant_values=_NEG)

    # Scoped-VMEM budget from actual residency (weights single-buffered,
    # streamed blocks double-buffered) + headroom.
    def _sz(dt):
        return jnp.dtype(dt).itemsize
    est = (D * H_pad * _sz(w_dt)                     # W_d   (Buffered(1))
           + H_pad * H_pad * _sz(wh_dt)              # W_h   (Buffered(1))
           + H_pad * O_pad * _sz(w_dt)               # W_o   (Buffered(1))
           + (H_pad + O_pad) * 4                     # biases
           + batch_tile * H_pad * 4                  # h0    (Buffered(1))
           + 2 * batch_tile * D * _sz(x_dt)          # x_t   (double-buffered)
           + 2 * batch_tile * O_pad * _sz(out_dt)    # out   (double-buffered)
           + 2 * batch_tile * H_pad * 4              # final-hidden output
           + batch_tile * H_pad * 4)                 # h_acc scratch
    vmem_limit = int(min(max(2 * est + (8 << 20), 16 << 20), 100 << 20))

    # TODO(synk): if bf16 whole-weight residency
    # (H_pad^2 + H_pad*(D + O_pad)) * 2 bytes exceeds ~40-48 MiB (H_pad >~ 4-5k),
    # switch to K-tiled weights with a reduction grid axis (v7x VMEM is 64 MiB).
    # TODO(synk): small-batch/long-T regime (B_pad <= ~64): move the time loop
    # inside the kernel (pltpu.emit_pipeline over xs/out in pl.ANY) and hold the
    # weights in MXU staging via pltpu.matmul_push_rhs to avoid the per-step
    # RHS re-push and ~0.35us/step grid overhead.

    const1 = pl.Buffered(1)  # constant-index inputs: no second pipeline buffer

    grid_spec = pltpu.PrefetchScalarGridSpec(
        num_scalar_prefetch=0,
        grid=(nb, T + 1),  # (batch tiles, time + flush); time MUST be last
        in_specs=[
            pl.BlockSpec((1, batch_tile, D),
                         lambda b, t: (jnp.minimum(t, T - 1), b, 0)),       # x_t
            pl.BlockSpec((batch_tile, H_pad), lambda b, t: (b, 0),
                         pipeline_mode=const1),                             # h0
            pl.BlockSpec((D, H_pad), lambda b, t: (0, 0),
                         pipeline_mode=const1),                             # W_d
            pl.BlockSpec((H_pad, H_pad), lambda b, t: (0, 0),
                         pipeline_mode=const1),                             # W_h
            pl.BlockSpec((1, H_pad), lambda b, t: (0, 0),
                         pipeline_mode=const1),                             # b_i2h
            pl.BlockSpec((H_pad, O_pad), lambda b, t: (0, 0),
                         pipeline_mode=const1),                             # W_o
            pl.BlockSpec((1, O_pad), lambda b, t: (0, 0),
                         pipeline_mode=const1),                             # b_h2o
        ],
        out_specs=(
            pl.BlockSpec((batch_tile, H_pad), lambda b, t: (b, 0)),         # h_T
            pl.BlockSpec((1, batch_tile, O_pad),
                         lambda b, t: (jnp.maximum(t - 1, 0), b, 0)),       # log-probs
        ),
        scratch_shapes=[pltpu.VMEM((batch_tile, H_pad), jnp.float32)],      # h_acc
    )

    hT_p, out_p = pl.pallas_call(
        rnn_fused_kernel,
        out_shape=(
            jax.ShapeDtypeStruct((B_pad, H_pad), jnp.float32),
            jax.ShapeDtypeStruct((T, B_pad, O_pad), out_dt),
        ),
        grid_spec=grid_spec,
        compiler_params=pltpu.CompilerParams(
            dimension_semantics=("parallel", "arbitrary"),
            vmem_limit_bytes=vmem_limit),
    )(xs_p, h0_p, w_d_p, w_h_p, b_i_p, w_o_p, b_o_p)

    return hT_p[:B, :hidden_size], out_p[:, :B, :output_size]


def rnn_forward(data, hidden, w_i2h, b_i2h, w_h2o, b_h2o, **kwargs):
    """Single-step forward, identical semantics to the PyTorch module:
    returns (new_hidden, log_softmax_output)."""
    hT, out = rnn_forward_sequence(data[None], hidden, w_i2h, b_i2h, w_h2o,
                                   b_h2o, **kwargs)
    return hT, out[0]


def init_params(key, data_size, hidden_size, output_size):
    """Deterministic init mirroring PyTorch nn.Linear default (uniform +/- 1/sqrt(fan_in)).
    Weights stored pre-transposed: (in_features, out_features)."""
    input_size = data_size + hidden_size
    k1, k2, k3, k4 = jax.random.split(key, 4)
    bound_i = 1.0 / jnp.sqrt(input_size)
    bound_o = 1.0 / jnp.sqrt(hidden_size)
    w_i2h = jax.random.uniform(k1, (input_size, hidden_size), jnp.float32,
                               -bound_i, bound_i)
    b_i2h = jax.random.uniform(k2, (1, hidden_size), jnp.float32,
                               -bound_i, bound_i)
    w_h2o = jax.random.uniform(k3, (hidden_size, output_size), jnp.float32,
                               -bound_o, bound_o)
    b_h2o = jax.random.uniform(k4, (1, output_size), jnp.float32,
                               -bound_o, bound_o)
    return w_i2h, b_i2h, w_h2o, b_h2o


def _ref_cell(data, hidden, w_i2h, b_i2h, w_h2o, b_h2o):
    """Pure-JAX reference of the PyTorch forward (high-precision matmuls)."""
    hi = jax.lax.Precision.HIGHEST
    combined = jnp.concatenate([data, hidden], axis=1)
    h = jnp.dot(combined, w_i2h, precision=hi) + b_i2h
    logits = jnp.dot(h, w_h2o, precision=hi) + b_h2o
    return h, jax.nn.log_softmax(logits, axis=1)


if __name__ == "__main__":
    data_size, hidden_size, output_size = 16, 32, 8
    batch, seq_len = 2, 8

    key = jax.random.PRNGKey(0)
    k_param, k_data = jax.random.split(key)

    w_i2h, b_i2h, w_h2o, b_h2o = init_params(
        k_param, data_size, hidden_size, output_size)

    xs = jax.random.normal(k_data, (seq_len, batch, data_size), jnp.float32)
    hidden0 = jnp.zeros((batch, hidden_size), jnp.float32)  # initHidden, broadcast

    # --- single-step forward (matches the nn.Module forward exactly), f32 ---
    new_hidden, log_probs = rnn_forward(xs[0], hidden0, w_i2h, b_i2h, w_h2o, b_h2o)
    jax.block_until_ready((new_hidden, log_probs))

    ref_h, ref_out = _ref_cell(xs[0], hidden0, w_i2h, b_i2h, w_h2o, b_h2o)
    assert jnp.allclose(new_hidden, ref_h, atol=1e-4, rtol=1e-4), "hidden mismatch"
    assert jnp.allclose(log_probs, ref_out, atol=1e-4, rtol=1e-4), "output mismatch"

    # --- fused sequence forward (one pallas_call for all T steps), f32 ---
    hT, outs = rnn_forward_sequence(xs, hidden0, w_i2h, b_i2h, w_h2o, b_h2o)
    jax.block_until_ready((hT, outs))

    h_ref = hidden0
    ref_outs = []
    for t in range(seq_len):
        h_ref, o_ref = _ref_cell(xs[t], h_ref, w_i2h, b_i2h, w_h2o, b_h2o)
        ref_outs.append(o_ref)
    ref_outs = jnp.stack(ref_outs, axis=0)
    assert jnp.allclose(hT, h_ref, atol=1e-4, rtol=1e-4), "sequence hidden mismatch"
    assert jnp.allclose(outs, ref_outs, atol=1e-4, rtol=1e-4), "sequence output mismatch"

    # --- bf16 fast path (bf16 weights/activations/output, f32 accumulation) ---
    hT_bf, outs_bf = rnn_forward_sequence(
        xs, hidden0, w_i2h, b_i2h, w_h2o, b_h2o,
        weight_dtype=jnp.bfloat16, out_dtype=jnp.bfloat16)
    jax.block_until_ready((hT_bf, outs_bf))
    assert jnp.allclose(hT_bf, h_ref, atol=1e-1, rtol=1e-1), "bf16 hidden drifted"
    assert jnp.allclose(outs_bf.astype(jnp.float32), ref_outs,
                        atol=1.5e-1, rtol=1e-1), "bf16 output drifted"

    print("KERNEL_OK")
</pallas_src>

<mosaic_0001>
module attributes {stable_mosaic.version = 11 : i64} {
  func.func @rnn_fused_kernel(%arg0: i32, %arg1: i32, %arg2: memref<1x8x16xf32, #tpu.memory_space<vmem>>, %arg3: memref<8x128xf32, #tpu.memory_space<vmem>>, %arg4: memref<16x128xf32, #tpu.memory_space<vmem>>, %arg5: memref<128x128xf32, #tpu.memory_space<vmem>>, %arg6: memref<1x128xf32, #tpu.memory_space<vmem>>, %arg7: memref<128x128xf32, #tpu.memory_space<vmem>>, %arg8: memref<1x128xf32, #tpu.memory_space<vmem>>, %arg9: memref<8x128xf32, #tpu.memory_space<vmem>>, %arg10: memref<1x8x128xf32, #tpu.memory_space<vmem>>, %arg11: memref<8x128xf32, #tpu.memory_space<vmem>>) attributes {dimension_semantics = [#tpu.dimension_semantics<parallel>, #tpu.dimension_semantics<arbitrary>], iteration_bounds = array<i64: 1, 2>, scalar_prefetch = 0 : i64, scratch_operands = 1 : i64, tpu.core_type = #tpu.core_type<tc>, window_params = [{transform_indices = @transform_0, window_bounds = array<i64: 1, 8, 16>}, {pipeline_mode = #tpu.pipeline_mode<synchronous>, transform_indices = @transform_1, window_bounds = array<i64: 8, 128>}, {pipeline_mode = #tpu.pipeline_mode<synchronous>, transform_indices = @transform_2, window_bounds = array<i64: 16, 128>}, {pipeline_mode = #tpu.pipeline_mode<synchronous>, transform_indices = @transform_3, window_bounds = array<i64: 128, 128>}, {pipeline_mode = #tpu.pipeline_mode<synchronous>, transform_indices = @transform_4, window_bounds = array<i64: 1, 128>}, {pipeline_mode = #tpu.pipeline_mode<synchronous>, transform_indices = @transform_5, window_bounds = array<i64: 128, 128>}, {pipeline_mode = #tpu.pipeline_mode<synchronous>, transform_indices = @transform_6, window_bounds = array<i64: 1, 128>}, {transform_indices = @transform_7, window_bounds = array<i64: 8, 128>}, {transform_indices = @transform_8, window_bounds = array<i64: 1, 8, 128>}]} {
    %c0_i32 = arith.constant 0 : i32
    %0 = arith.cmpi eq, %arg1, %c0_i32 : i32
    %1 = arith.extui %0 : i1 to i32
    %c0_i32_0 = arith.constant 0 : i32
    %2 = arith.cmpi ne, %1, %c0_i32_0 : i32
    scf.if %2 {
      %c0_7 = arith.constant 0 : index
      %c0_8 = arith.constant 0 : index
      %13 = vector.load %arg3[%c0_7, %c0_8] : memref<8x128xf32, #tpu.memory_space<vmem>>, vector<8x128xf32>
      %c0_9 = arith.constant 0 : index
      %c0_10 = arith.constant 0 : index
      %14 = vector.load %arg11[%c0_9, %c0_10] : memref<8x128xf32, #tpu.memory_space<vmem>>, vector<8x128xf32>
      tpu.vector_store %arg11[%c0_9, %c0_10], %13 {strides = array<i32>} : memref<8x128xf32, #tpu.memory_space<vmem>>, vector<8x128xf32>,
    } else {
    }
    %c0 = arith.constant 0 : index
    %c0_1 = arith.constant 0 : index
    %3 = vector.load %arg11[%c0, %c0_1] : memref<8x128xf32, #tpu.memory_space<vmem>>, vector<8x128xf32>
    %c0_i32_2 = arith.constant 0 : i32
    %4 = arith.cmpi sgt, %arg1, %c0_i32_2 : i32
    %5 = arith.extui %4 : i1 to i32
    %c0_i32_3 = arith.constant 0 : i32
    %6 = arith.cmpi ne, %5, %c0_i32_3 : i32
    scf.if %6 {
      %c0_7 = arith.constant 0 : index
      %c0_8 = arith.constant 0 : index
      %13 = vector.load %arg7[%c0_7, %c0_8] : memref<128x128xf32, #tpu.memory_space<vmem>>, vector<128x128xf32>
      %cst = arith.constant dense<0.000000e+00> : vector<8x128xf32>
      %14 = tpu.matmul %3, %13, %cst {dimension_numbers = #tpu.dot_dimension_numbers<[1], [0], [0], [1], [0, 0, 1, 1], [], []>} : vector<8x128xf32>, vector<128x128xf32>, vector<8x128xf32> -> vector<8x128xf32>
      %c0_9 = arith.constant 0 : index
      %c0_10 = arith.constant 0 : index
      %15 = vector.load %arg8[%c0_9, %c0_10] : memref<1x128xf32, #tpu.memory_space<vmem>>, vector<1x128xf32>
      %16 = vector.broadcast %15 : vector<1x128xf32> to vector<8x128xf32>
      %17 = arith.addf %14, %16 : vector<8x128xf32>
      %cst_11 = arith.constant dense<0xFF800000> : vector<8xf32>
      %18 = vector.multi_reduction <maximumf>, %17, %cst_11 [1] : vector<8x128xf32> to vector<8xf32>
      %19 = vector.shape_cast %18 : vector<8xf32> to vector<8x1xf32>
      %20 = vector.broadcast %19 : vector<8x1xf32> to vector<8x128xf32>
      %21 = arith.subf %17, %20 : vector<8x128xf32>
      %22 = math.exp %21 : vector<8x128xf32>
      %cst_12 = arith.constant dense<0.000000e+00> : vector<8xf32>
      %23 = vector.multi_reduction <add>, %22, %cst_12 [1] : vector<8x128xf32> to vector<8xf32>
      %24 = vector.shape_cast %23 : vector<8xf32> to vector<8x1xf32>
      %25 = math.log %24 : vector<8x1xf32>
      %26 = vector.broadcast %25 : vector<8x1xf32> to vector<8x128xf32>
      %27 = arith.subf %21, %26 : vector<8x128xf32>
      %c0_13 = arith.constant 0 : index
      %c0_14 = arith.constant 0 : index
      %c0_15 = arith.constant 0 : index
      %28 = vector.load %arg10[%c0_13, %c0_14, %c0_15] : memref<1x8x128xf32, #tpu.memory_space<vmem>>, vector<1x8x128xf32>
      %29 = vector.shape_cast %28 : vector<1x8x128xf32> to vector<8x128xf32>
      %30 = vector.shape_cast %27 : vector<8x128xf32> to vector<1x8x128xf32>
      tpu.vector_store %arg10[%c0_13, %c0_14, %c0_15], %30 {strides = array<i32>} : memref<1x8x128xf32, #tpu.memory_space<vmem>>, vector<1x8x128xf32>,
    } else {
    }
    %c1_i32 = arith.constant 1 : i32
    %7 = arith.cmpi slt, %arg1, %c1_i32 : i32
    %8 = arith.extui %7 : i1 to i32
    %c0_i32_4 = arith.constant 0 : i32
    %9 = arith.cmpi ne, %8, %c0_i32_4 : i32
    scf.if %9 {
      %c0_7 = arith.constant 0 : index
      %c0_8 = arith.constant 0 : index
      %c0_9 = arith.constant 0 : index
      %13 = vector.load %arg2[%c0_7, %c0_8, %c0_9] : memref<1x8x16xf32, #tpu.memory_space<vmem>>, vector<1x8x16xf32>
      %14 = vector.shape_cast %13 : vector<1x8x16xf32> to vector<8x16xf32>
      %c0_10 = arith.constant 0 : index
      %c0_11 = arith.constant 0 : index
      %15 = vector.load %arg4[%c0_10, %c0_11] : memref<16x128xf32, #tpu.memory_space<vmem>>, vector<16x128xf32>
      %cst = arith.constant dense<0.000000e+00> : vector<8x128xf32>
      %16 = tpu.matmul %14, %15, %cst {dimension_numbers = #tpu.dot_dimension_numbers<[1], [0], [0], [1], [0, 0, 1, 1], [], []>} : vector<8x16xf32>, vector<16x128xf32>, vector<8x128xf32> -> vector<8x128xf32>
      %c0_12 = arith.constant 0 : index
      %c0_13 = arith.constant 0 : index
      %17 = vector.load %arg5[%c0_12, %c0_13] : memref<128x128xf32, #tpu.memory_space<vmem>>, vector<128x128xf32>
      %cst_14 = arith.constant dense<0.000000e+00> : vector<8x128xf32>
      %18 = tpu.matmul %3, %17, %cst_14 {dimension_numbers = #tpu.dot_dimension_numbers<[1], [0], [0], [1], [0, 0, 1, 1], [], []>} : vector<8x128xf32>, vector<128x128xf32>, vector<8x128xf32> -> vector<8x128xf32>
      %19 = arith.addf %16, %18 : vector<8x128xf32>
      %c0_15 = arith.constant 0 : index
      %c0_16 = arith.constant 0 : index
      %20 = vector.load %arg6[%c0_15, %c0_16] : memref<1x128xf32, #tpu.memory_space<vmem>>, vector<1x128xf32>
      %21 = vector.broadcast %20 : vector<1x128xf32> to vector<8x128xf32>
      %22 = arith.addf %19, %21 : vector<8x128xf32>
      %c0_17 = arith.constant 0 : index
      %c0_18 = arith.constant 0 : index
      %23 = vector.load %arg11[%c0_17, %c0_18] : memref<8x128xf32, #tpu.memory_space<vmem>>, vector<8x128xf32>
      tpu.vector_store %arg11[%c0_17, %c0_18], %22 {strides = array<i32>} : memref<8x128xf32, #tpu.memory_space<vmem>>, vector<8x128xf32>,
    } else {
    }
    %c1_i32_5 = arith.constant 1 : i32
    %10 = arith.cmpi eq, %arg1, %c1_i32_5 : i32
    %11 = arith.extui %10 : i1 to i32
    %c0_i32_6 = arith.constant 0 : i32
    %12 = arith.cmpi ne, %11, %c0_i32_6 : i32
    scf.if %12 {
      %c0_7 = arith.constant 0 : index
      %c0_8 = arith.constant 0 : index
      %13 = vector.load %arg9[%c0_7, %c0_8] : memref<8x128xf32, #tpu.memory_space<vmem>>, vector<8x128xf32>
      tpu.vector_store %arg9[%c0_7, %c0_8], %3 {strides = array<i32>} : memref<8x128xf32, #tpu.memory_space<vmem>>, vector<8x128xf32>,
    } else {
    }
    return
  }
  func.func @transform_0(%arg0: i32, %arg1: i32) -> (i32, i32, i32) {
    %c0_i32 = arith.constant 0 : i32
    %0 = arith.minsi %arg1, %c0_i32 : i32
    %c0_i32_0 = arith.constant 0 : i32
    %c0_i32_1 = arith.constant 0 : i32
    return %0, %arg0, %c0_i32_0 : i32, i32, i32
  }
  func.func @transform_1(%arg0: i32, %arg1: i32) -> (i32, i32) {
    %c0_i32 = arith.constant 0 : i32
    %c0_i32_0 = arith.constant 0 : i32
    return %arg0, %c0_i32 : i32, i32
  }
  func.func @transform_2(%arg0: i32, %arg1: i32) -> (i32, i32) {
    %c0_i32 = arith.constant 0 : i32
    %c0_i32_0 = arith.constant 0 : i32
    %c0_i32_1 = arith.constant 0 : i32
    return %c0_i32, %c0_i32_0 : i32, i32
  }
  func.func @transform_3(%arg0: i32, %arg1: i32) -> (i32, i32) {
    %c0_i32 = arith.constant 0 : i32
    %c0_i32_0 = arith.constant 0 : i32
    %c0_i32_1 = arith.constant 0 : i32
    return %c0_i32, %c0_i32_0 : i32, i32
  }
  func.func @transform_4(%arg0: i32, %arg1: i32) -> (i32, i32) {
    %c0_i32 = arith.constant 0 : i32
    %c0_i32_0 = arith.constant 0 : i32
    %c0_i32_1 = arith.constant 0 : i32
    return %c0_i32, %c0_i32_0 : i32, i32
  }
  func.func @transform_5(%arg0: i32, %arg1: i32) -> (i32, i32) {
    %c0_i32 = arith.constant 0 : i32
    %c0_i32_0 = arith.constant 0 : i32
    %c0_i32_1 = arith.constant 0 : i32
    return %c0_i32, %c0_i32_0 : i32, i32
  }
  func.func @transform_6(%arg0: i32, %arg1: i32) -> (i32, i32) {
    %c0_i32 = arith.constant 0 : i32
    %c0_i32_0 = arith.constant 0 : i32
    %c0_i32_1 = arith.constant 0 : i32
    return %c0_i32, %c0_i32_0 : i32, i32
  }
  func.func @transform_7(%arg0: i32, %arg1: i32) -> (i32, i32) {
    %c0_i32 = arith.constant 0 : i32
    %c0_i32_0 = arith.constant 0 : i32
    return %arg0, %c0_i32 : i32, i32
  }
  func.func @transform_8(%arg0: i32, %arg1: i32) -> (i32, i32, i32) {
    %c1_i32 = arith.constant 1 : i32
    %0 = arith.subi %arg1, %c1_i32 : i32
    %c0_i32 = arith.constant 0 : i32
    %1 = arith.maxsi %0, %c0_i32 : i32
    %c0_i32_0 = arith.constant 0 : i32
    %c0_i32_1 = arith.constant 0 : i32
    return %1, %arg0, %c0_i32_0 : i32, i32, i32
  }
}

</mosaic_0001>

<bundles_post_ra>
// kernel: rnn_forward_sequence.1
= control target key start
LH: loop header
LB: loop body
LE: loop exit
PB: predicated region body
PF: predicated region fallthrough
CT: control target
= control target key end

     0   :  { %s1115_s27 = smov 0   ;;  %s1117_s28 = smov 0   ;;  %s1278_s0 = inlined_call_operand.vmem [shape: f32[1,8,16], index: 0, kind: input, shape index: {}]   ;;  %s1279_s1 = inlined_call_operand.vmem [shape: f32[8,128], index: 1, kind: input, shape index: {}]   ;;  %s1280_s2 = inlined_call_operand.vmem [shape: f32[16,128], index: 2, kind: input, shape index: {}]   ;;  %s1281_s3 = inlined_call_operand.vmem [shape: f32[128,128], index: 3, kind: input, shape index: {}]   ;;  %s1282_s4 = inlined_call_operand.vmem [shape: f32[1,128], index: 4, kind: input, shape index: {}]   ;;  %s1283_s5 = inlined_call_operand.vmem [shape: f32[128,128], index: 5, kind: input, shape index: {}]   ;;  %s1284_s6 = inlined_call_operand.vmem [shape: f32[1,128], index: 6, kind: input, shape index: {}]   ;;  %s1285_s7 = inlined_call_operand.vmem [shape: f32[8,128], index: 7, kind: output, shape index: {0}]   ;;  %s1286_s8 = inlined_call_operand.vmem [shape: f32[1,8,128], index: 8, kind: output, shape index: {1}]  }
   0x1   :  { %s1119_s29 = smov 0  }
   0x2 LB: > { %s28_s30 = sadd.s32 1, %s1058_s28  ;;  %p819_p0 = scmp.ge.s32.totalorder %s1062_s29, 1  ;;  %s1062_s29 = sphi %s1119_s29, %s19_s29   ;;  %s1058_s28 = sphi %s1117_s28, %s1288_s28   ;;  %s1054_s27 = sphi %s1115_s27, %s1287_s27  }
   0x3   : > { %p29_p1 = scmp.ge.s32.totalorder %s28_s30, 2  ;;  %p306_p2 = scmp.lt.s32.totalorder %s1062_s29, 3 }
   0x5   : > { %s1290_s30 = smov (%p29_p1, %s28_s30), 0  ;;  %p307_p3 = pnand %p819_p0, %p306_p2 }
   0x6   : > { %p357_p4 = scmp.lt.s32.totalorder (!%p307_p3), %s1054_s27, 0  ;;  %p831_p5 = scmp.ne.s32.totalorder (!%p307_p3), %s1054_s27, 0 }
   0x7   : > { %310 = sbr.rel (%p307_p3) target bundleno = 848 (0x350), region = 48 }
   0xe   : > { %s358_s9 = scalar_select %p357_p4, %s1054_s27, 0 }
   0xf   : > { %392 = sbr.rel (%p831_p5) target bundleno = 22 (0x16), region = 52  ;;  %v393_v0 = vld [vmem:[%s1279_s1] sm:$0xff] (!%p831_p5) }
  0x10   : > { %s1292_s9 = smov (!%p357_p4, %s358_s9), 0  ;;  %394 = vst [vmem:[#allocation2] sm:$0xff] (!%p831_p5), %v393_v0 }
  0x11   : > { %s823_s10 = sshll.u32 %s1292_s9, 3 }
  0x12   : > { %s1140_s13 = scalar_lea.vmem %s1278_s0, %s823_s10 }
  0x16 PF: > { %p832_p6 = scmp.le.s32.totalorder %s1054_s27, 0 }
  0x17   : > { %v1146_v1 = vld [vmem:[#allocation2] sm:$0xff]  ;;  %v401_v3 = vld [vmem:[%s1283_s5 + $0x8] sm:$0xff] (!%p832_p6)  ;;  %v402_v4 = vld [vmem:[%s1283_s5 + $0x10] sm:$0xff] (!%p832_p6)  ;;  %v1064_v5 = vmov (!%p832_p6), 0.0|0.0   ;;  %vm1065_vm0 = vmmov (!%p832_p6), 0   ;;  %v1066_v8 = vmov (!%p832_p6), 0.0  }
  0x18   : > { %399 = sbr.rel (%p832_p6) target bundleno = 587 (0x24b), region = 56  ;;  %v400_v2 = vld [vmem:[%s1283_s5] sm:$0xff] (!%p832_p6)  ;;  %955 = vmatprep.subr.bf16.mxu0 (!%p832_p6), %v1064_v5  ;;  %v403_v7 = vld [vmem:[%s1283_s5 + $0x18] sm:$0xff] (!%p832_p6)  ;;  %910 = vmatprep.mubr.msk.f32.mxu0 (!%p832_p6), %vm1065_vm0, %v1066_v8  ;;  %v405_v11 = vld [vmem:[%s1283_s5 + $0x28] sm:$0xff] (!%p832_p6) }
  0x19   : > { %v956_v6 = vpack.c.bf16 (!%p832_p6), %v401_v3, %v400_v2  ;;  %v959_v9 = vpack.c.bf16 (!%p832_p6), %v403_v7, %v402_v4  ;;  %v404_v10 = vld [vmem:[%s1283_s5 + $0x20] sm:$0xff] (!%p832_p6)  ;;  %v406_v13 = vld [vmem:[%s1283_s5 + $0x30] sm:$0xff] (!%p832_p6)  ;;  %v407_v14 = vld [vmem:[%s1283_s5 + $0x38] sm:$0xff] (!%p832_p6) }
  0x1a   : > { %v962_v12 = vpack.c.bf16 (!%p832_p6), %v405_v11, %v404_v10  ;;  %v965_v15 = vpack.c.bf16 (!%p832_p6), %v407_v14, %v406_v13  ;;  %v408_v16 = vld [vmem:[%s1283_s5 + $0x40] sm:$0xff] (!%p832_p6)  ;;  %v409_v17 = vld [vmem:[%s1283_s5 + $0x48] sm:$0xff] (!%p832_p6)  ;;  %v410_v19 = vld [vmem:[%s1283_s5 + $0x50] sm:$0xff] (!%p832_p6) }
  0x1b   : > { %957 = vmatpush3.bf16.msra.mxu0 (!%p832_p6), %v956_v6  ;;  %v968_v18 = vpack.c.bf16 (!%p832_p6), %v409_v17, %v408_v16  ;;  %v411_v20 = vld [vmem:[%s1283_s5 + $0x58] sm:$0xff] (!%p832_p6)  ;;  %v412_v22 = vld [vmem:[%s1283_s5 + $0x60] sm:$0xff] (!%p832_p6)  ;;  %v413_v23 = vld [vmem:[%s1283_s5 + $0x68] sm:$0xff] (!%p832_p6) }
  0x1c   : > { %958 = vmatprep.subr.bf16.mxu0 (!%p832_p6), %v1064_v5  ;;  %v971_v21 = vpack.c.bf16 (!%p832_p6), %v411_v20, %v410_v19  ;;  %v974_v24 = vpack.c.bf16 (!%p832_p6), %v413_v23, %v412_v22  ;;  %v414_v25 = vld [vmem:[%s1283_s5 + $0x70] sm:$0xff] (!%p832_p6)  ;;  %v415_v26 = vld [vmem:[%s1283_s5 + $0x78] sm:$0xff] (!%p832_p6)  ;;  %v833_v28 = vld [vmem:[%s1284_s6] ss:$0 sm:$0xff] (!%p832_p6) }
  0x1d   : > { %v977_v27 = vpack.c.bf16 (!%p832_p6), %v415_v26, %v414_v25 }
  0x1f   : > { %960 = vmatpush3.bf16.msra.mxu0 %v959_v9 }
  0x20   : > { %961 = vmatprep.subr.bf16.mxu0 %v1064_v5 }
  0x23   : > { %963 = vmatpush3.bf16.msra.mxu0 %v962_v12 }
  0x24   : > { %964 = vmatprep.subr.bf16.mxu0 %v1064_v5 }
  0x27   : > { %966 = vmatpush3.bf16.msra.mxu0 %v965_v15 }
  0x28   : > { %967 = vmatprep.subr.bf16.mxu0 %v1064_v5 }
  0x2b   : > { %969 = vmatpush3.bf16.msra.mxu0 %v968_v18 }
  0x2c   : > { %970 = vmatprep.subr.bf16.mxu0 %v1064_v5 }
  0x2f   : > { %972 = vmatpush3.bf16.msra.mxu0 %v971_v21 }
  0x30   : > { %973 = vmatprep.subr.bf16.mxu0 %v1064_v5 }
  0x33   : > { %975 = vmatpush3.bf16.msra.mxu0 %v974_v24 }
  0x34   : > { %976 = vmatprep.subr.bf16.mxu0 %v1064_v5 }
  0x37   : > { %978 = vmatpush3.bf16.msra.mxu0 %v977_v27 }
  0x3a   : > { %911 = vmatmul.mubr.f32.vlgmr.msra.gmra.mrb[0].mxu0 %v1146_v1 }
 0x10d   : > { %v489_v29 = vpop.f32.mrb[0].mxu0 }
 0x10e   : > { %v490_v30 = vadd.f32 %v833_v28, %v489_v29  ;;  %v912_v31 = vpop.f32.mrb[1].mxu0 }
 0x110   : > { %493 = vmax.xlane.f32.xlu0 %v490_v30 }
 0x19d   : > { %v494_v32 = vpop.xlane.xlu0 %493 }
 0x19e   : > { %v495_v33 = vsub.f32 %v490_v30, %v494_v32 }
 0x1a0   : > { %v496_v34 = vmul.f32 1.442695, %v495_v33 }
 0x1a2   : > { %1036 = vpow2.f32 %v496_v34 }
 0x1ac   : > { %v1037_v35 = vpop.eup %1036 }
 0x1ad   : > { %498 = vadd.xlane.f32.xlu0 %v1037_v35 }
 0x23a   : > { %v499_v36 = vpop.xlane.xlu0 %498 }
 0x23b   : > { %1038 = vlog2.f32 %v499_v36 }
 0x245   : > { %v1039_v37 = vpop.eup %1038 }
 0x246   : > { %v501_v38 = vmul.f32 0.6931472, %v1039_v37 }
 0x248   : > { %v502_v39 = vsub.f32 %v495_v33, %v501_v38 }
 0x24a   : > { %503 = vst [vmem:[%s1286_s8] sm:$0xff] %v502_v39 }
 0x24b PF: > { %p834_p7 = scmp.ge.s32.totalorder %s1054_s27, 1 }
 0x24c   : > { %v511_v40 = vld [vmem:[%s1281_s3] sm:$0xff] (!%p834_p7)  ;;  %v512_v41 = vld [vmem:[%s1281_s3 + $0x8] sm:$0xff] (!%p834_p7)  ;;  %v513_v42 = vld [vmem:[%s1281_s3 + $0x10] sm:$0xff] (!%p834_p7)  ;;  %v1067_v43 = vmov (!%p834_p7), 0.0|0.0   ;;  %vm1068_vm1 = vmmov (!%p834_p7), 0   ;;  %v1069_v46 = vmov (!%p834_p7), 0.0  }
 0x24d   : > { %507 = sbr.rel (%p834_p7) target bundleno = 839 (0x347), region = 60  ;;  %979 = vmatprep.subr.bf16.mxu0 (!%p834_p7), %v1067_v43  ;;  %v980_v44 = vpack.c.bf16 (!%p834_p7), %v512_v41, %v511_v40  ;;  %v514_v45 = vld [vmem:[%s1281_s3 + $0x18] sm:$0xff] (!%p834_p7)  ;;  %1003 = vmatprep.subr.bf16.mxu1 (!%p834_p7), %v1067_v43  ;;  %v515_v48 = vld [vmem:[%s1281_s3 + $0x20] sm:$0xff] (!%p834_p7)  ;;  %v516_v49 = vld [vmem:[%s1281_s3 + $0x28] sm:$0xff] (!%p834_p7)  ;;  %vm597_vm2 = vcmask (!%p834_p7), 130048  }
 0x24e   : > { %952 = vmatprep.mubr.msk.f32.mxu1 (!%p834_p7), %vm1068_vm1, %v1069_v46  ;;  %945 = vmatprep.mubr.msk.f32.mxu0 (!%p834_p7), %vm1068_vm1, %v1069_v46  ;;  %v983_v47 = vpack.c.bf16 (!%p834_p7), %v514_v45, %v513_v42  ;;  %v509_v50 = vld [vmem:[%s1280_s2] sm:$0xff] (!%p834_p7)  ;;  %v510_v51 = vld [vmem:[%s1280_s2 + $0x8] sm:$0xff] (!%p834_p7)  ;;  %v986_v53 = vpack.c.bf16 (!%p834_p7), %v516_v49, %v515_v48  ;;  %v517_v54 = vld [vmem:[%s1281_s3 + $0x30] sm:$0xff] (!%p834_p7) }
 0x24f   : > { %981 = vmatpush3.bf16.msra.mxu0 (!%p834_p7), %v980_v44  ;;  %v1004_v52 = vpack.c.bf16 (!%p834_p7), %v510_v51, %v509_v50  ;;  %v518_v55 = vld [vmem:[%s1281_s3 + $0x38] sm:$0xff] (!%p834_p7)  ;;  %v508_v56 = vld [vmem:[%s1140_s13] sm:$0xff] (!%p834_p7)  ;;  %v520_v59 = vld [vmem:[%s1281_s3 + $0x48] sm:$0xff] (!%p834_p7) }
 0x250   : > { %982 = vmatprep.subr.bf16.mxu0 (!%p834_p7), %v1067_v43  ;;  %v989_v57 = vpack.c.bf16 (!%p834_p7), %v518_v55, %v517_v54  ;;  %v519_v58 = vld [vmem:[%s1281_s3 + $0x40] sm:$0xff] (!%p834_p7)  ;;  %v521_v61 = vld [vmem:[%s1281_s3 + $0x50] sm:$0xff] (!%p834_p7)  ;;  %v522_v62 = vld [vmem:[%s1281_s3 + $0x58] sm:$0xff] (!%p834_p7) }
 0x251   : > { %1005 = vmatpush3.bf16.msra.mxu1 (!%p834_p7), %v1004_v52  ;;  %v992_v60 = vpack.c.bf16 (!%p834_p7), %v520_v59, %v519_v58  ;;  %v995_v63 = vpack.c.bf16 (!%p834_p7), %v522_v62, %v521_v61  ;;  %v523_v0 = vld [vmem:[%s1281_s3 + $0x60] sm:$0xff] (!%p834_p7)  ;;  %v524_v2 = vld [vmem:[%s1281_s3 + $0x68] sm:$0xff] (!%p834_p7)  ;;  %v525_v4 = vld [vmem:[%s1281_s3 + $0x70] sm:$0xff] (!%p834_p7) }
 0x252   : > { %v998_v3 = vpack.c.bf16 (!%p834_p7), %v524_v2, %v523_v0  ;;  %v526_v5 = vld [vmem:[%s1281_s3 + $0x78] sm:$0xff] (!%p834_p7)  ;;  %v836_v10 = vld [vmem:[%s1282_s4] ss:$0 sm:$0xff] (!%p834_p7) }
 0x253   : > { %984 = vmatpush3.bf16.msra.mxu0 (!%p834_p7), %v983_v47  ;;  %v1001_v6 = vpack.c.bf16 (!%p834_p7), %v526_v5, %v525_v4 }
 0x254   : > { %985 = vmatprep.subr.bf16.mxu0 %v1067_v43  ;;  %953 = vmatmul.mubr.msk.f32.vlgmr.msra.gmra.mrb[0].mxu1 %vm597_vm2, %v508_v56 }
 0x257   : > { %987 = vmatpush3.bf16.msra.mxu0 %v986_v53 }
 0x258   : > { %988 = vmatprep.subr.bf16.mxu0 %v1067_v43 }
 0x25b   : > { %990 = vmatpush3.bf16.msra.mxu0 %v989_v57 }
 0x25c   : > { %991 = vmatprep.subr.bf16.mxu0 %v1067_v43 }
 0x25f   : > { %993 = vmatpush3.bf16.msra.mxu0 %v992_v60 }
 0x260   : > { %994 = vmatprep.subr.bf16.mxu0 %v1067_v43 }
 0x263   : > { %996 = vmatpush3.bf16.msra.mxu0 %v995_v63 }
 0x264   : > { %997 = vmatprep.subr.bf16.mxu0 %v1067_v43 }
 0x267   : > { %999 = vmatpush3.bf16.msra.mxu0 %v998_v3 }
 0x268   : > { %1000 = vmatprep.subr.bf16.mxu0 %v1067_v43 }
 0x26b   : > { %1002 = vmatpush3.bf16.msra.mxu0 %v1001_v6 }
 0x26e   : > { %946 = vmatmul.mubr.f32.vlgmr.msra.gmra.mrb[0].mxu0 %v1146_v1 }
 0x327   : > { %v667_v7 = vpop.f32.mrb[0].mxu1 }
 0x328   : > { %v954_v8 = vpop.f32.mrb[1].mxu1 }
 0x341   : > { %v593_v9 = vpop.f32.mrb[0].mxu0 }
 0x342   : > { %v668_v11 = vadd.f32 %v667_v7, %v593_v9  ;;  %v947_v12 = vpop.f32.mrb[1].mxu0 }
 0x344   : > { %v678_v13 = vadd.f32 %v836_v10, %v668_v11 }
 0x346   : > { %679 = vst [vmem:[#allocation2] sm:$0xff] %v678_v13 }
 0x347 PF: > { %p837_p8 = scmp.ne.s32.totalorder %s1054_s27, 1 }
 0x348   : > { %684 = vst [vmem:[%s1285_s7] sm:$0xff] (!%p837_p8), %v1146_v1 }
 0x349   : > { %683 = sbr.rel (%p837_p8) target bundleno = 848 (0x350), region = 64 }
 0x350 PF: > { %s19_s29 = sadd.s32 1, %s1062_s29   ;;  %s1287_s27 = smov %s1058_s28 }
 0x351   : > { %p16_p9 = scmp.ge.s32.totalorder %s19_s29, 4   ;;  %s1288_s28 = smov %s1290_s30 }
 0x353   :  { %18 = sbr.rel (!%p16_p9) target bundleno = 2 (0x2), region = 109 }

</bundles_post_ra>
